<compile_context>
chip_gen: v5e
topology: v5e:2x2
jax: 0.10.0
libtpu: 0.0.40
codegen_flags: <defaults>
</compile_context>

<pallas_src>
import math

import jax
import jax.numpy as jnp
from jax.experimental import pallas as pl
from jax.experimental.pallas import tpu as pltpu


# ----------------------------- fused kernel -------------------------------- #

def _make_gnn_fused_kernel(n_layers):
    """Builds the fused forward kernel for a fixed (trace-time) layer count."""

    def kernel(*refs):
        eps_ref = refs[0]            # SMEM  (n_layers,)  per-layer eps scalars
        a_ref = refs[1]              # VMEM  (N, N)       adjacency (already +I)
        diag_ref = refs[2]           # VMEM  (N, 1)       diag(A)
        x_ref = refs[3]              # VMEM  (N, input_dim)
        idx = 4
        layer_refs = []
        for _ in range(n_layers):
            layer_refs.append(refs[idx:idx + 6])   # w1,b1,w2,b2,w3,b3
            idx += 6
        proj_segs = refs[idx:idx + n_layers + 1]   # out_proj weight row-segments
        idx += n_layers + 1
        proj_b_ref = refs[idx]
        o_ref = refs[idx + 1]

        a = a_ref[...]
        diag_col = diag_ref[...]                   # (N, 1)
        x = x_ref[...]

        # out_proj accumulated per hidden-state segment (replaces concat):
        #   out = h0 @ Wp0 + h1 @ Wp1 + ... + hL @ WpL + b
        acc = (jnp.dot(x, proj_segs[0][...], preferred_element_type=jnp.float32)
               + proj_b_ref[...])

        h = x
        for l in range(n_layers):                  # small fixed count -> unrolled
            w1, b1, w2, b2, w3, b3 = layer_refs[l]
            eps = eps_ref[l]
            # A'@h == A@h + (eps - 1) * diag(A) * h   (no NxN mask / select)
            ah = jnp.dot(a, h, preferred_element_type=jnp.float32)
            ah = ah + (eps - 1.0) * (diag_col * h)
            # mlp: Linear -> (Dropout=id) -> ReLU -> Linear -> (Dropout=id) -> ReLU
            h = jnp.maximum(
                jnp.dot(ah, w1[...], preferred_element_type=jnp.float32) + b1[...],
                0.0)
            h = jnp.maximum(
                jnp.dot(h, w2[...], preferred_element_type=jnp.float32) + b2[...],
                0.0)
            # self.linear + relu
            h = jnp.maximum(
                jnp.dot(h, w3[...], preferred_element_type=jnp.float32) + b3[...],
                0.0)
            # F.dropout(., dropout_1) = identity in eval mode
            acc = acc + jnp.dot(h, proj_segs[l + 1][...],
                                preferred_element_type=jnp.float32)

        o_ref[...] = acc.astype(o_ref.dtype)

    return kernel


# ------------------------------ wrapper ------------------------------------ #

_VMEM = pl.BlockSpec(memory_space=pltpu.MemorySpace.VMEM)
_SMEM = pl.BlockSpec(memory_space=pltpu.MemorySpace.SMEM)


def gnn_forward(A, X, layer_params, proj_w, proj_b):
    """A: [N, N] dense adjacency (already includes +I), X: [N, input_dim]."""
    n, input_dim = X.shape
    n_layers = len(layer_params)
    hidden = layer_params[0]["w3"].shape[1]
    out_dim = proj_w.shape[1]

    # ---- plain-JAX glue (tiny, done once per call) ----
    diag = jnp.diagonal(A).reshape(n, 1).astype(jnp.float32)     # diag(A), reused by every layer
    eps_all = jnp.concatenate([p["eps"] for p in layer_params]).astype(jnp.float32)
    seg_sizes = [input_dim] + [hidden] * n_layers
    proj_segs = []
    off = 0
    for s in seg_sizes:                                          # row-split out_proj weight
        proj_segs.append(proj_w[off:off + s, :])
        off += s

    args = [eps_all, A, diag, X]
    for p in layer_params:
        args += [p["w1"], p["b1"], p["w2"], p["b2"], p["w3"], p["b3"]]
    args += proj_segs
    args += [proj_b]

    in_specs = [_SMEM] + [_VMEM] * (len(args) - 1)

    # ---- advisory cost estimate ----
    flops = 0
    d = input_dim
    for _ in range(n_layers):
        flops += 2 * n * n * d               # A @ h
        flops += 2 * n * d * hidden          # mlp linear 1
        flops += 2 * n * hidden * hidden     # mlp linear 2
        flops += 2 * n * hidden * hidden     # self.linear
        flops += 2 * n * hidden * out_dim    # out_proj segment
        d = hidden
    flops += 2 * n * input_dim * out_dim     # out_proj segment for h0
    bytes_accessed = (sum(int(a.size) * a.dtype.itemsize for a in args)
                      + n * out_dim * 4)

    return pl.pallas_call(
        _make_gnn_fused_kernel(n_layers),
        out_shape=jax.ShapeDtypeStruct((n, out_dim), jnp.float32),
        in_specs=in_specs,
        out_specs=_VMEM,
        cost_estimate=pl.CostEstimate(flops=flops, transcendentals=0,
                                      bytes_accessed=bytes_accessed),
    )(*args)


# --------------------------- parameter init -------------------------------- #

def _init_linear(key, in_dim, out_dim):
    """Matches torch.nn.Linear default init; weight stored transposed [in, out]."""
    k1, k2 = jax.random.split(key)
    bound = 1.0 / math.sqrt(in_dim)
    w = jax.random.uniform(k1, (in_dim, out_dim), jnp.float32, -bound, bound)
    b = jax.random.uniform(k2, (1, out_dim), jnp.float32, -bound, bound)
    return w, b


def init_gnn_params(key, input_dim, hidden_dim, output_dim, n_layers):
    layer_params = []
    in_dim = input_dim
    for _ in range(n_layers):
        key, k1, k2, k3 = jax.random.split(key, 4)
        w1, b1 = _init_linear(k1, in_dim, hidden_dim)
        w2, b2 = _init_linear(k2, hidden_dim, hidden_dim)
        w3, b3 = _init_linear(k3, hidden_dim, hidden_dim)
        layer_params.append({
            "eps": jnp.full((1,), 0.1, jnp.float32),   # reset_parameters: 0.1/sqrt(1)
            "w1": w1, "b1": b1, "w2": w2, "b2": b2, "w3": w3, "b3": b3,
        })
        in_dim = hidden_dim
    key, kp = jax.random.split(key)
    proj_w, proj_b = _init_linear(kp, input_dim + hidden_dim * n_layers, output_dim)
    return layer_params, proj_w, proj_b


# -------------------------- pure-JAX reference ------------------------------ #

def _ref_forward(A, X, layer_params, proj_w, proj_b):
    n = A.shape[0]
    eye = jnp.eye(n, dtype=bool)
    hidden_states = [X]
    h = X
    for p in layer_params:
        a_mod = jnp.where(eye, p["eps"][0] * A, A)
        h = a_mod @ h
        h = jax.nn.relu(h @ p["w1"] + p["b1"])
        h = jax.nn.relu(h @ p["w2"] + p["b2"])
        h = jax.nn.relu(h @ p["w3"] + p["b3"])
        hidden_states.append(h)
    cat = jnp.concatenate(hidden_states, axis=-1)
    return cat @ proj_w + proj_b


# ------------------------------- main --------------------------------------- #

if __name__ == "__main__":
    N = 16            # nodes
    INPUT_DIM = 8
    HIDDEN_DIM = 32
    OUTPUT_DIM = 4
    N_LAYERS = 2

    key = jax.random.PRNGKey(0)
    key, ka, kx, kp = jax.random.split(key, 4)

    # Dense weighted adjacency (stands in for to_dense_adj(edge_index, edge_weight)),
    # then A = A + I as in GNN.forward.
    A = jax.random.uniform(ka, (N, N), jnp.float32, 0.0, 1.0)
    A = A + jnp.eye(N, dtype=jnp.float32)
    X = jax.random.normal(kx, (N, INPUT_DIM), jnp.float32)

    layer_params, proj_w, proj_b = init_gnn_params(
        kp, INPUT_DIM, HIDDEN_DIM, OUTPUT_DIM, N_LAYERS)

    out = gnn_forward(A, X, layer_params, proj_w, proj_b)
    out = jax.block_until_ready(out)

    ref = _ref_forward(A, X, layer_params, proj_w, proj_b)

    assert out.shape == (N, OUTPUT_DIM), out.shape
    assert bool(jnp.all(jnp.isfinite(out)))
    assert bool(jnp.allclose(out, ref, rtol=1e-4, atol=1e-4)), \
        float(jnp.max(jnp.abs(out - ref)))
    # TODO(synk): dropout layers are treated as identity (inference mode); training-mode
    # stochastic dropout is intentionally not emulated.
    print("KERNEL_OK")
</pallas_src>

<mosaic_0001>
module attributes {stable_mosaic.version = 11 : i64} {
  func.func @kernel(%arg0: memref<2xf32, #tpu.memory_space<smem>>, %arg1: memref<16x16xf32, #tpu.memory_space<vmem>>, %arg2: memref<16x1xf32, #tpu.memory_space<vmem>>, %arg3: memref<16x8xf32, #tpu.memory_space<vmem>>, %arg4: memref<8x32xf32, #tpu.memory_space<vmem>>, %arg5: memref<1x32xf32, #tpu.memory_space<vmem>>, %arg6: memref<32x32xf32, #tpu.memory_space<vmem>>, %arg7: memref<1x32xf32, #tpu.memory_space<vmem>>, %arg8: memref<32x32xf32, #tpu.memory_space<vmem>>, %arg9: memref<1x32xf32, #tpu.memory_space<vmem>>, %arg10: memref<32x32xf32, #tpu.memory_space<vmem>>, %arg11: memref<1x32xf32, #tpu.memory_space<vmem>>, %arg12: memref<32x32xf32, #tpu.memory_space<vmem>>, %arg13: memref<1x32xf32, #tpu.memory_space<vmem>>, %arg14: memref<32x32xf32, #tpu.memory_space<vmem>>, %arg15: memref<1x32xf32, #tpu.memory_space<vmem>>, %arg16: memref<8x4xf32, #tpu.memory_space<vmem>>, %arg17: memref<32x4xf32, #tpu.memory_space<vmem>>, %arg18: memref<32x4xf32, #tpu.memory_space<vmem>>, %arg19: memref<1x4xf32, #tpu.memory_space<vmem>>, %arg20: memref<16x4xf32, #tpu.memory_space<vmem>>) attributes {dimension_semantics = [], scalar_prefetch = 0 : i64, scratch_operands = 0 : i64, tpu.core_type = #tpu.core_type<tc>} {
    %c0 = arith.constant 0 : index
    %c0_0 = arith.constant 0 : index
    %0 = vector.load %arg1[%c0, %c0_0] : memref<16x16xf32, #tpu.memory_space<vmem>>, vector<16x16xf32>
    %c0_1 = arith.constant 0 : index
    %c0_2 = arith.constant 0 : index
    %1 = vector.load %arg2[%c0_1, %c0_2] : memref<16x1xf32, #tpu.memory_space<vmem>>, vector<16x1xf32>
    %c0_3 = arith.constant 0 : index
    %c0_4 = arith.constant 0 : index
    %2 = vector.load %arg3[%c0_3, %c0_4] : memref<16x8xf32, #tpu.memory_space<vmem>>, vector<16x8xf32>
    %c0_5 = arith.constant 0 : index
    %c0_6 = arith.constant 0 : index
    %3 = vector.load %arg16[%c0_5, %c0_6] : memref<8x4xf32, #tpu.memory_space<vmem>>, vector<8x4xf32>
    %cst = arith.constant dense<0.000000e+00> : vector<16x4xf32>
    %4 = tpu.matmul %2, %3, %cst {dimension_numbers = #tpu.dot_dimension_numbers<[1], [0], [0], [1], [0, 0, 1, 1], [], []>} : vector<16x8xf32>, vector<8x4xf32>, vector<16x4xf32> -> vector<16x4xf32>
    %c0_7 = arith.constant 0 : index
    %c0_8 = arith.constant 0 : index
    %5 = vector.load %arg19[%c0_7, %c0_8] : memref<1x4xf32, #tpu.memory_space<vmem>>, vector<1x4xf32>
    %6 = vector.broadcast %5 : vector<1x4xf32> to vector<16x4xf32>
    %7 = arith.addf %4, %6 : vector<16x4xf32>
    %c0_9 = arith.constant 0 : index
    %8 = memref.load %arg0[%c0_9] : memref<2xf32, #tpu.memory_space<smem>>
    %cst_10 = arith.constant dense<0.000000e+00> : vector<16x8xf32>
    %9 = tpu.matmul %0, %2, %cst_10 {dimension_numbers = #tpu.dot_dimension_numbers<[1], [0], [0], [1], [0, 0, 1, 1], [], []>} : vector<16x16xf32>, vector<16x8xf32>, vector<16x8xf32> -> vector<16x8xf32>
    %cst_11 = arith.constant 1.000000e+00 : f32
    %10 = arith.subf %8, %cst_11 : f32
    %11 = vector.broadcast %1 : vector<16x1xf32> to vector<16x8xf32>
    %12 = arith.mulf %11, %2 : vector<16x8xf32>
    %13 = vector.broadcast %10 : f32 to vector<16x8xf32>
    %14 = arith.mulf %13, %12 : vector<16x8xf32>
    %15 = arith.addf %9, %14 : vector<16x8xf32>
    %c0_12 = arith.constant 0 : index
    %c0_13 = arith.constant 0 : index
    %16 = vector.load %arg4[%c0_12, %c0_13] : memref<8x32xf32, #tpu.memory_space<vmem>>, vector<8x32xf32>
    %cst_14 = arith.constant dense<0.000000e+00> : vector<16x32xf32>
    %17 = tpu.matmul %15, %16, %cst_14 {dimension_numbers = #tpu.dot_dimension_numbers<[1], [0], [0], [1], [0, 0, 1, 1], [], []>} : vector<16x8xf32>, vector<8x32xf32>, vector<16x32xf32> -> vector<16x32xf32>
    %c0_15 = arith.constant 0 : index
    %c0_16 = arith.constant 0 : index
    %18 = vector.load %arg5[%c0_15, %c0_16] : memref<1x32xf32, #tpu.memory_space<vmem>>, vector<1x32xf32>
    %19 = vector.broadcast %18 : vector<1x32xf32> to vector<16x32xf32>
    %20 = arith.addf %17, %19 : vector<16x32xf32>
    %cst_17 = arith.constant 0.000000e+00 : f32
    %21 = vector.broadcast %cst_17 : f32 to vector<16x32xf32>
    %22 = arith.maximumf %20, %21 : vector<16x32xf32>
    %c0_18 = arith.constant 0 : index
    %c0_19 = arith.constant 0 : index
    %23 = vector.load %arg6[%c0_18, %c0_19] : memref<32x32xf32, #tpu.memory_space<vmem>>, vector<32x32xf32>
    %cst_20 = arith.constant dense<0.000000e+00> : vector<16x32xf32>
    %24 = tpu.matmul %22, %23, %cst_20 {dimension_numbers = #tpu.dot_dimension_numbers<[1], [0], [0], [1], [0, 0, 1, 1], [], []>} : vector<16x32xf32>, vector<32x32xf32>, vector<16x32xf32> -> vector<16x32xf32>
    %c0_21 = arith.constant 0 : index
    %c0_22 = arith.constant 0 : index
    %25 = vector.load %arg7[%c0_21, %c0_22] : memref<1x32xf32, #tpu.memory_space<vmem>>, vector<1x32xf32>
    %26 = vector.broadcast %25 : vector<1x32xf32> to vector<16x32xf32>
    %27 = arith.addf %24, %26 : vector<16x32xf32>
    %cst_23 = arith.constant 0.000000e+00 : f32
    %28 = vector.broadcast %cst_23 : f32 to vector<16x32xf32>
    %29 = arith.maximumf %27, %28 : vector<16x32xf32>
    %c0_24 = arith.constant 0 : index
    %c0_25 = arith.constant 0 : index
    %30 = vector.load %arg8[%c0_24, %c0_25] : memref<32x32xf32, #tpu.memory_space<vmem>>, vector<32x32xf32>
    %cst_26 = arith.constant dense<0.000000e+00> : vector<16x32xf32>
    %31 = tpu.matmul %29, %30, %cst_26 {dimension_numbers = #tpu.dot_dimension_numbers<[1], [0], [0], [1], [0, 0, 1, 1], [], []>} : vector<16x32xf32>, vector<32x32xf32>, vector<16x32xf32> -> vector<16x32xf32>
    %c0_27 = arith.constant 0 : index
    %c0_28 = arith.constant 0 : index
    %32 = vector.load %arg9[%c0_27, %c0_28] : memref<1x32xf32, #tpu.memory_space<vmem>>, vector<1x32xf32>
    %33 = vector.broadcast %32 : vector<1x32xf32> to vector<16x32xf32>
    %34 = arith.addf %31, %33 : vector<16x32xf32>
    %cst_29 = arith.constant 0.000000e+00 : f32
    %35 = vector.broadcast %cst_29 : f32 to vector<16x32xf32>
    %36 = arith.maximumf %34, %35 : vector<16x32xf32>
    %c0_30 = arith.constant 0 : index
    %c0_31 = arith.constant 0 : index
    %37 = vector.load %arg17[%c0_30, %c0_31] : memref<32x4xf32, #tpu.memory_space<vmem>>, vector<32x4xf32>
    %cst_32 = arith.constant dense<0.000000e+00> : vector<16x4xf32>
    %38 = tpu.matmul %36, %37, %cst_32 {dimension_numbers = #tpu.dot_dimension_numbers<[1], [0], [0], [1], [0, 0, 1, 1], [], []>} : vector<16x32xf32>, vector<32x4xf32>, vector<16x4xf32> -> vector<16x4xf32>
    %39 = arith.addf %7, %38 : vector<16x4xf32>
    %c1 = arith.constant 1 : index
    %40 = memref.load %arg0[%c1] : memref<2xf32, #tpu.memory_space<smem>>
    %cst_33 = arith.constant dense<0.000000e+00> : vector<16x32xf32>
    %41 = tpu.matmul %0, %36, %cst_33 {dimension_numbers = #tpu.dot_dimension_numbers<[1], [0], [0], [1], [0, 0, 1, 1], [], []>} : vector<16x16xf32>, vector<16x32xf32>, vector<16x32xf32> -> vector<16x32xf32>
    %cst_34 = arith.constant 1.000000e+00 : f32
    %42 = arith.subf %40, %cst_34 : f32
    %43 = vector.broadcast %1 : vector<16x1xf32> to vector<16x32xf32>
    %44 = arith.mulf %43, %36 : vector<16x32xf32>
    %45 = vector.broadcast %42 : f32 to vector<16x32xf32>
    %46 = arith.mulf %45, %44 : vector<16x32xf32>
    %47 = arith.addf %41, %46 : vector<16x32xf32>
    %c0_35 = arith.constant 0 : index
    %c0_36 = arith.constant 0 : index
    %48 = vector.load %arg10[%c0_35, %c0_36] : memref<32x32xf32, #tpu.memory_space<vmem>>, vector<32x32xf32>
    %cst_37 = arith.constant dense<0.000000e+00> : vector<16x32xf32>
    %49 = tpu.matmul %47, %48, %cst_37 {dimension_numbers = #tpu.dot_dimension_numbers<[1], [0], [0], [1], [0, 0, 1, 1], [], []>} : vector<16x32xf32>, vector<32x32xf32>, vector<16x32xf32> -> vector<16x32xf32>
    %c0_38 = arith.constant 0 : index
    %c0_39 = arith.constant 0 : index
    %50 = vector.load %arg11[%c0_38, %c0_39] : memref<1x32xf32, #tpu.memory_space<vmem>>, vector<1x32xf32>
    %51 = vector.broadcast %50 : vector<1x32xf32> to vector<16x32xf32>
    %52 = arith.addf %49, %51 : vector<16x32xf32>
    %cst_40 = arith.constant 0.000000e+00 : f32
    %53 = vector.broadcast %cst_40 : f32 to vector<16x32xf32>
    %54 = arith.maximumf %52, %53 : vector<16x32xf32>
    %c0_41 = arith.constant 0 : index
    %c0_42 = arith.constant 0 : index
    %55 = vector.load %arg12[%c0_41, %c0_42] : memref<32x32xf32, #tpu.memory_space<vmem>>, vector<32x32xf32>
    %cst_43 = arith.constant dense<0.000000e+00> : vector<16x32xf32>
    %56 = tpu.matmul %54, %55, %cst_43 {dimension_numbers = #tpu.dot_dimension_numbers<[1], [0], [0], [1], [0, 0, 1, 1], [], []>} : vector<16x32xf32>, vector<32x32xf32>, vector<16x32xf32> -> vector<16x32xf32>
    %c0_44 = arith.constant 0 : index
    %c0_45 = arith.constant 0 : index
    %57 = vector.load %arg13[%c0_44, %c0_45] : memref<1x32xf32, #tpu.memory_space<vmem>>, vector<1x32xf32>
    %58 = vector.broadcast %57 : vector<1x32xf32> to vector<16x32xf32>
    %59 = arith.addf %56, %58 : vector<16x32xf32>
    %cst_46 = arith.constant 0.000000e+00 : f32
    %60 = vector.broadcast %cst_46 : f32 to vector<16x32xf32>
    %61 = arith.maximumf %59, %60 : vector<16x32xf32>
    %c0_47 = arith.constant 0 : index
    %c0_48 = arith.constant 0 : index
    %62 = vector.load %arg14[%c0_47, %c0_48] : memref<32x32xf32, #tpu.memory_space<vmem>>, vector<32x32xf32>
    %cst_49 = arith.constant dense<0.000000e+00> : vector<16x32xf32>
    %63 = tpu.matmul %61, %62, %cst_49 {dimension_numbers = #tpu.dot_dimension_numbers<[1], [0], [0], [1], [0, 0, 1, 1], [], []>} : vector<16x32xf32>, vector<32x32xf32>, vector<16x32xf32> -> vector<16x32xf32>
    %c0_50 = arith.constant 0 : index
    %c0_51 = arith.constant 0 : index
    %64 = vector.load %arg15[%c0_50, %c0_51] : memref<1x32xf32, #tpu.memory_space<vmem>>, vector<1x32xf32>
    %65 = vector.broadcast %64 : vector<1x32xf32> to vector<16x32xf32>
    %66 = arith.addf %63, %65 : vector<16x32xf32>
    %cst_52 = arith.constant 0.000000e+00 : f32
    %67 = vector.broadcast %cst_52 : f32 to vector<16x32xf32>
    %68 = arith.maximumf %66, %67 : vector<16x32xf32>
    %c0_53 = arith.constant 0 : index
    %c0_54 = arith.constant 0 : index
    %69 = vector.load %arg18[%c0_53, %c0_54] : memref<32x4xf32, #tpu.memory_space<vmem>>, vector<32x4xf32>
    %cst_55 = arith.constant dense<0.000000e+00> : vector<16x4xf32>
    %70 = tpu.matmul %68, %69, %cst_55 {dimension_numbers = #tpu.dot_dimension_numbers<[1], [0], [0], [1], [0, 0, 1, 1], [], []>} : vector<16x32xf32>, vector<32x4xf32>, vector<16x4xf32> -> vector<16x4xf32>
    %71 = arith.addf %39, %70 : vector<16x4xf32>
    %c0_56 = arith.constant 0 : index
    %c0_57 = arith.constant 0 : index
    %72 = vector.load %arg20[%c0_56, %c0_57] : memref<16x4xf32, #tpu.memory_space<vmem>>, vector<16x4xf32>
    tpu.vector_store %arg20[%c0_56, %c0_57], %71 {strides = array<i32>} : memref<16x4xf32, #tpu.memory_space<vmem>>, vector<16x4xf32>,
    return
  }
}

</mosaic_0001>

<bundles_post_ra>
// kernel: tpu_custom_call.1
= control target key start
LH: loop header
LB: loop body
LE: loop exit
PB: predicated region body
PF: predicated region fallthrough
CT: control target
= control target key end

     0   :  { %s1214_s0 = inlined_call_operand.hbm [shape: f32[2], index: 0, kind: input, shape index: {}]   ;;  %s1215_s1 = inlined_call_operand.hbm [shape: f32[16,16], index: 1, kind: input, shape index: {}]   ;;  %s1216_s2 = inlined_call_operand.vmem [shape: f32[16,1], index: 2, kind: input, shape index: {}]   ;;  %s1217_s3 = inlined_call_operand.vmem [shape: f32[16,8], index: 3, kind: input, shape index: {}]   ;;  %s1218_s4 = inlined_call_operand.hbm [shape: f32[8,32], index: 4, kind: input, shape index: {}]   ;;  %s1219_s5 = inlined_call_operand.hbm [shape: f32[1,32], index: 5, kind: input, shape index: {}]   ;;  %s1220_s6 = inlined_call_operand.vmem [shape: f32[32,32], index: 6, kind: input, shape index: {}]   ;;  %s1221_s7 = inlined_call_operand.hbm [shape: f32[1,32], index: 7, kind: input, shape index: {}]   ;;  %s1222_s8 = inlined_call_operand.vmem [shape: f32[32,32], index: 8, kind: input, shape index: {}]   ;;  %s1223_s9 = inlined_call_operand.hbm [shape: f32[1,32], index: 9, kind: input, shape index: {}]   ;;  %s1224_s10 = inlined_call_operand.vmem [shape: f32[32,32], index: 10, kind: input, shape index: {}]   ;;  %s1225_s11 = inlined_call_operand.hbm [shape: f32[1,32], index: 11, kind: input, shape index: {}]   ;;  %s1226_s12 = inlined_call_operand.vmem [shape: f32[32,32], index: 12, kind: input, shape index: {}]   ;;  %s1227_s13 = inlined_call_operand.hbm [shape: f32[1,32], index: 13, kind: input, shape index: {}]   ;;  %s1228_s14 = inlined_call_operand.hbm [shape: f32[32,32], index: 14, kind: input, shape index: {}]   ;;  %s1229_s15 = inlined_call_operand.hbm [shape: f32[1,32], index: 15, kind: input, shape index: {}]   ;;  %s1230_s16 = inlined_call_operand.vmem [shape: f32[8,4], index: 16, kind: input, shape index: {}]   ;;  %s1231_s17 = inlined_call_operand.vmem [shape: f32[32,4], index: 17, kind: input, shape index: {}]   ;;  %s1232_s18 = inlined_call_operand.vmem [shape: f32[32,4], index: 18, kind: input, shape index: {}]   ;;  %s1233_s19 = inlined_call_operand.vmem [shape: f32[1,4], index: 19, kind: input, shape index: {}]   ;;  %s1234_s20 = inlined_call_operand.vmem [shape: f32[16,4], index: 20, kind: output, shape index: {}]  }
   0x1   :  { %1238 = sst [smem:[#allocation24_spill]] %s1214_s0 }
   0x2   :  { %1239 = sst [smem:[#allocation25_spill]] %s1215_s1 }
   0x3   :  { %1240 = sst [smem:[#allocation26_spill]] %s1216_s2 }
   0x4   :  { %1241 = sst [smem:[#allocation27_spill]] %s1217_s3 }
   0x5   :  { %1242 = sst [smem:[#allocation28_spill]] %s1218_s4 }
   0x6   :  { %1243 = sst [smem:[#allocation29_spill]] %s1234_s20 }
   0x7   :  { %25 = vsyncpa [#allocation4], 0 }
   0x8   :  { %26 = vsyncpa [#allocation3], 0 }
   0x9   :  { %27 = vsyncpa [#allocation7], 0 }
   0xa   :  { %28 = vsyncpa [#allocation10], 0 }
   0xb   :  { %29 = vsyncpa [#allocation13], 0  ;;  %s1244_s23 = sld [smem:[#allocation28_spill]] }
  0x11   :  { %s62_s24 = sshll.u32 %s1244_s23, 4  ;;  %s63_s24 = int_to_ptr.hbm [resolvable:$true] %s62_s24 }
  0x12   :  { %30 = vsyncpa [#allocation16], 0  ;;  %s925_s2 = smov [#allocation6]   ;;  %s86_s27 = sshll.u32 %s1221_s7, 4  ;;  %s87_s27 = int_to_ptr.hbm [resolvable:$true] %s86_s27 }
  0x13   :  { %s64_s25 = sshll.u32 %s925_s2, 4  ;;  %s926_s28 = smov [#allocation9]   ;;  %s65_s25 = int_to_ptr.vmem [resolvable:$true] %s64_s25 }
  0x14   :  { %67 = dma.hbm_to_vmem [thread:$0]  %s63_s24, 128, %s65_s25, [#allocation7]  }
  0x15   :  { %s88_s4 = sshll.u32 %s926_s28, 4  ;;  %s112_s0 = sshll.u32 %s1225_s11, 4  ;;  %s89_s4 = int_to_ptr.vmem [resolvable:$true] %s88_s4  ;;  %s113_s0 = int_to_ptr.hbm [resolvable:$true] %s112_s0 }
  0x16   :  { %91 = dma.hbm_to_vmem [thread:$0]  %s87_s27, 16, %s89_s4, [#allocation10]  }
  0x17   :  { %s927_s21 = smov [#allocation12]   ;;  %s135_s2 = sshll.u32 %s1228_s14, 4  ;;  %s136_s2 = int_to_ptr.hbm [resolvable:$true] %s135_s2 }
  0x18   :  { %s114_s1 = sshll.u32 %s927_s21, 4  ;;  %s928_s7 = smov [#allocation15]   ;;  %s115_s1 = int_to_ptr.vmem [resolvable:$true] %s114_s1 }
  0x19   :  { %117 = dma.hbm_to_vmem [thread:$0]  %s113_s0, 16, %s115_s1, [#allocation13]  }
  0x1a   :  { %s137_s24 = sshll.u32 %s928_s7, 4  ;;  %s1245_s26 = sld [smem:[#allocation24_spill]]  ;;  %s138_s24 = int_to_ptr.vmem [resolvable:$true] %s137_s24 }
  0x1b   :  { %s929_s11 = smov 128   ;;  %s930_s29 = smov 8  }
  0x1c   :  { %143 = dma.hbm_to_vmem [thread:$0]  %s136_s2, 512, %s138_s24, [#allocation16], %s929_s11, %s929_s11, %s930_s29  }
  0x1d   :  { %s1246_s30 = sld [smem:[#allocation25_spill]]  ;;  %s931_s20 = smov [#allocation2]  }
  0x1e   :  { %s932_s14 = smov [#allocation5]   ;;  %s73_s23 = sshll.u32 %s1219_s5, 4  ;;  %s74_s23 = int_to_ptr.hbm [resolvable:$true] %s73_s23 }
  0x1f   :  { %s46_s0 = sshll.u32 %s932_s14, 4  ;;  %s99_s2 = sshll.u32 %s1223_s9, 4  ;;  %s47_s0 = int_to_ptr.vmem [resolvable:$true] %s46_s0  ;;  %s100_s2 = int_to_ptr.hbm [resolvable:$true] %s99_s2 }
  0x20   :  { %s36_s28 = sshll.u32 %s1245_s26, 4  ;;  %s933_s24 = smov [#allocation8]   ;;  %s37_s28 = int_to_ptr.hbm [resolvable:$true] %s36_s28 }
  0x21   :  { %39 = dma.hbm_to_smem %s37_s28, 16, %s931_s20, [#allocation4]  }
  0x22   :  { %s75_s3 = sshll.u32 %s933_s24, 4  ;;  %s934_s20 = smov [#allocation11]   ;;  %s76_s3 = int_to_ptr.vmem [resolvable:$true] %s75_s3 }
  0x23   :  { %s44_s21 = sshll.u32 %s1246_s30, 4  ;;  %s101_s26 = sshll.u32 %s934_s20, 4  ;;  %s45_s21 = int_to_ptr.hbm [resolvable:$true] %s44_s21  ;;  %s102_s26 = int_to_ptr.vmem [resolvable:$true] %s101_s26 }
  0x24   :  { %52 = dma.hbm_to_vmem [thread:$0]  %s45_s21, 256, %s47_s0, [#allocation3], %s929_s11, %s929_s11, %s930_s29  }
  0x25   :  { %78 = dma.hbm_to_vmem [thread:$0]  %s74_s23, 16, %s76_s3, [#allocation7]  }
  0x26   :  { %s125_s4 = sshll.u32 %s1227_s13, 4  ;;  %s149_s29 = sshll.u32 %s1229_s15, 4  ;;  %s126_s4 = int_to_ptr.hbm [resolvable:$true] %s125_s4  ;;  %s150_s29 = int_to_ptr.hbm [resolvable:$true] %s149_s29 }
  0x27   :  { %104 = dma.hbm_to_vmem [thread:$0]  %s100_s2, 16, %s102_s26, [#allocation10]  }
  0x28   :  { %s935_s30 = smov [#allocation14]   ;;  %s936_s21 = smov [#allocation17]  }
  0x29   :  { %s127_s9 = sshll.u32 %s935_s30, 4  ;;  %s151_s14 = sshll.u32 %s936_s21, 4  ;;  %s128_s9 = int_to_ptr.vmem [resolvable:$true] %s127_s9  ;;  %s152_s14 = int_to_ptr.vmem [resolvable:$true] %s151_s14 }
  0x2a   :  { %130 = dma.hbm_to_vmem [thread:$0]  %s126_s4, 16, %s128_s9, [#allocation13]  }
  0x2b   :  { %154 = dma.hbm_to_vmem [thread:$0]  %s150_s29, 16, %s152_s14, [#allocation16]  }
  0x2c   :  { %913 = dma.done.wait [#allocation4], 16  }
  0x2d   :  { %914 = vsyncadd [#allocation4], 4294967280 }
  0x2e   :  { %915 = dma.done.wait [#allocation3], 256  }
  0x2f   :  { %916 = vsyncadd [#allocation3], 4294967040 }
  0x30   :  { %917 = dma.done.wait [#allocation7], 144  }
  0x31   :  { %918 = vsyncadd [#allocation7], 4294967152 }
  0x32   :  { %919 = dma.done.wait [#allocation10], 32  }
  0x33   :  { %920 = vsyncadd [#allocation10], 4294967264 }
  0x34   :  { %921 = dma.done.wait [#allocation13], 32  }
  0x35   :  { %922 = vsyncadd [#allocation13], 4294967264 }
  0x36   :  { %923 = dma.done.wait [#allocation16], 528  }
  0x37   :  { %924 = vsyncadd [#allocation16], 4294966768 }
  0x38   :  { %203 = sfence }
  0x39   :  { %s1247_s0 = sld [smem:[#allocation27_spill]]  ;;  %v1082_v3 = vld [vmem:[#allocation5] sm:$0xff]  ;;  %vm262_vm0 = vcmask 130048   ;;  %v1084_v4 = vld [vmem:[#allocation5 + $0x8] sm:$0xff]  ;;  %v937_v5 = vmov 0   ;;  %v292_v7 = vld [vmem:[#allocation6] sm:$0xff] }
  0x3a   :  { %s1248_s25 = sld [smem:[#allocation26_spill]]  ;;  %677 = vset.pattern.permute.xlu0 %v937_v5  ;;  %318 = vmatpush.msra.mxu2 %v292_v7  ;;  %v331_v8 = vld [vmem:[%s1220_s6 + $0x18] sm:$0xff]  ;;  %vm215_vm1 = vcmask 64512   ;;  %v330_v20 = vld [vmem:[%s1220_s6 + $0x10] sm:$0xff]  ;;  %v329_v21 = vld [vmem:[%s1220_s6 + $0x8] sm:$0xff]  ;;  %vm336_vm2 = vcmask 261120  }
  0x3b   :  { %s245_s26 = sld [smem:[#allocation2]]  ;;  %v328_v22 = vld [vmem:[%s1220_s6] sm:$0xff]  ;;  %v371_v24 = vld [vmem:[%s1222_s8 + $0x18] sm:$0xff]  ;;  %v370_v25 = vld [vmem:[%s1222_s8 + $0x10] sm:$0xff]  ;;  %vm624_vm3 = vcmask 31744  }
  0x3c   :  { %v210_v23 = vld [vmem:[%s1230_s16] sm:$0xff]  ;;  %v678_v26 = vld [vmem:[#allocation8] ss:$0 sm:$0xff]  ;;  %v369_v33 = vld [vmem:[%s1222_s8 + $0x8] sm:$0xff]  ;;  %s650_s13 = sld [smem:[#allocation2 + $0x1]] }
  0x3d   :  { %237 = vmatpush.msra.mxu0 %v210_v23  ;;  %v368_v34 = vld [vmem:[%s1222_s8] sm:$0xff]  ;;  %v410_v35 = vld [vmem:[%s1231_s17 + $0x18] sm:$0xff]  ;;  %v409_v43 = vld [vmem:[%s1231_s17 + $0x10] sm:$0xff] }
  0x3e   :  { %429 = vmatpush.msrb.mxu2 %v410_v35  ;;  %v679_v36 = vld [vmem:[#allocation9] ss:$0 sm:$0xff]  ;;  %v408_v44 = vld [vmem:[%s1231_s17 + $0x8] sm:$0xff]  ;;  %v407_v45 = vld [vmem:[%s1231_s17] sm:$0xff] }
  0x3f   :  { %v209_v0 = vld [vmem:[%s1247_s0 + $0x8] sm:$0xff]  ;;  %v208_v1 = vld [vmem:[%s1247_s0] sm:$0xff]  ;;  %394 = vmatpush.msrb.mxu0 %v371_v24  ;;  %v475_v48 = vld [vmem:[%s1224_s10 + $0x18] sm:$0xff] }
  0x40   :  { %283 = vmatpush.msra.mxu1 %v209_v0  ;;  %662 = vmatpush.msra.mxu3 %v209_v0  ;;  %v206_v2 = vld [vmem:[%s1248_s25] sm:$0xff]  ;;  %v207_v6 = vld [vmem:[%s1248_s25 + $0x8] sm:$0xff]  ;;  %v681_v49 = vld [vmem:[#allocation11] ss:$0 sm:$0xff] }
  0x41   :  { %249 = vperm.xlu0 %677, %v206_v2   ;;  %s639_s28 = sadd.f32 -1.0, %s245_s26  ;;  %637 = vmatmul.msk.f32.vlgmr.msra.gmra.mxu0 %vm215_vm1, %v208_v1  ;;  %v474_v56 = vld [vmem:[%s1224_s10 + $0x10] sm:$0xff]  ;;  %v473_v57 = vld [vmem:[%s1224_s10 + $0x8] sm:$0xff]  ;;  %v472_v58 = vld [vmem:[%s1224_s10] sm:$0xff] }
  0x42   :  { %284 = vmatpush.msra.mxu1 %v208_v1  ;;  %663 = vmatpush.msra.mxu3 %v208_v1  ;;  %v514_v59 = vld [vmem:[%s1226_s12 + $0x18] sm:$0xff]  ;;  %v513_v60 = vld [vmem:[%s1226_s12 + $0x10] sm:$0xff]  ;;  %v1175_v61 = vld [vmem:[%s1233_s19] ss:$0 sm:$0xff]  ;;  %s651_s6 = sadd.f32 -1.0, %s650_s13 }
  0x43   :  { %640 = vmatmul.msk.f32.vlgmr.msra.gmra.mxu1 %vm262_vm0, %v1082_v3  ;;  %641 = vmatmul.msk.f32.vlgmr.msra.gmra.mxu3 %vm262_vm0, %v1084_v4  ;;  %v259_v11 = vstv %s639_s28  ;;  %v592_v23 = vld [vmem:[%s1232_s18 + $0x18] sm:$0xff]  ;;  %v591_v24 = vld [vmem:[%s1232_s18 + $0x10] sm:$0xff]  ;;  %v684_v35 = vld [vmem:[#allocation17] ss:$0 sm:$0xff]  ;;  %s1249_s26 = sld [smem:[#allocation29_spill]] }
  0x44   :  { %355 = vmatpush.msrb.mxu3 %v331_v8  ;;  %395 = vmatpush.msrb.mxu0 %v370_v25  ;;  %v446_v2 = vstv %s651_s6  ;;  %v683_v25 = vld [vmem:[#allocation14] ss:$0 sm:$0xff] }
  0x45   :  { %430 = vmatpush.msrb.mxu2 %v409_v43 }
  0x46   :  { %356 = vmatpush.msrb.mxu3 %v330_v20  ;;  %396 = vmatpush.msrb.mxu0 %v369_v33  ;;  %v589_v33 = vld [vmem:[%s1232_s18] sm:$0xff] }
  0x47   :  { %431 = vmatpush.msrb.mxu2 %v408_v44 }
  0x48   :  { %357 = vmatpush.msrb.mxu3 %v329_v21  ;;  %397 = vmatpush.msrb.mxu0 %v368_v34  ;;  %v551_v21 = vld [vmem:[#allocation15 + $0x8] sm:$0xff] }
  0x49   :  { %254 = vperm.xlu0 %677, %v207_v6   ;;  %638 = vmatmul.msk.f32.gmra.mxu0 %vm215_vm1, %v209_v0 }
  0x4a   :  { %358 = vmatpush.msrb.mxu3 %v328_v22  ;;  %432 = vmatpush.msrb.mxu2 %v407_v45  ;;  %v550_v22 = vld [vmem:[#allocation15] sm:$0xff] }
  0x4b   :  { %537 = vmatpush.msra.mxu0 %v514_v59 }
  0x4c   :  { %498 = vmatpush.msra.mxu3 %v475_v48 }
  0x4d   :  { %538 = vmatpush.msra.mxu0 %v513_v60 }
  0x4e   :  { %499 = vmatpush.msra.mxu3 %v474_v56 }
  0x50   :  { %500 = vmatpush.msra.mxu3 %v473_v57 }
  0x52   :  { %501 = vmatpush.msra.mxu3 %v472_v58 }
  0xb3   :  { %v1096_v9 = vpop.permute.xlu0 %249 }
  0xb4   :  { %v257_v10 = vmul.f32 %v1096_v9, %v208_v1 }
  0xb6   :  { %v260_v12 = vmul.f32 %v259_v11, %v257_v10 }
  0xbb   :  { %v1099_v13 = vpop.permute.xlu0 %254 }
  0xbc   :  { %v258_v16 = vmul.f32 %v1099_v13, %v209_v0 }
  0xbe   :  { %v261_v17 = vmul.f32 %v259_v11, %v258_v16  ;;  %v239_v46 = vpop.f32.mrf.mxu0  ;;  %v512_v11 = vld [vmem:[%s1226_s12 + $0x8] sm:$0xff] }
  0xbf   :  { %v240_v62 = vadd.f32 %v1175_v61, %v239_v46  ;;  %539 = vmatpush.msra.mxu0 %v512_v11 }
  0xc0   :  { %v286_v14 = vpop.f32.mrf.mxu1 }
  0xc1   :  { %v287_v15 = vadd.f32 %v286_v14, %v260_v12  ;;  %v553_v12 = vld [vmem:[#allocation15 + $0x18] sm:$0xff]  ;;  %v552_v14 = vld [vmem:[#allocation15 + $0x10] sm:$0xff] }
  0xc3   :  { %642 = vmatmul.msk.f32.vlgmr.msra.gmra.mxu2 %vm215_vm1, %v287_v15 }
  0xc4   :  { %576 = vmatpush.msra.mxu2 %v553_v12 }
  0xc6   :  { %v289_v18 = vpop.f32.mrf.mxu3  ;;  %v1146_v47 = vpop.f32.mrf.mxu0  ;;  %577 = vmatpush.msra.mxu2 %v552_v14 }
  0xc7   :  { %v290_v19 = vadd.f32 %v289_v18, %v261_v17  ;;  %v243_v44 = vadd.f32 %v1175_v61, %v1146_v47 }
  0xc8   :  { %578 = vmatpush.msra.mxu2 %v551_v21 }
  0xca   :  { %579 = vmatpush.msra.mxu2 %v550_v22 }
  0xcb   :  { %643 = vmatmul.msk.f32.gmra.mxu2 %vm215_vm1, %v290_v19 }
 0x146   :  { %v320_v27 = vpop.f32.mrf.mxu2 }
 0x147   :  { %v321_v28 = vadd.f32 %v678_v26, %v320_v27 }
 0x149   :  { %v326_v29 = vmax.f32 %v321_v28, 0.0 }
 0x14b   :  { %644 = vmatmul.msk.f32.vlgmr.msrb.gmra.mxu3 %vm336_vm2, %v326_v29 }
 0x14e   :  { %v323_v30 = vpop.f32.mrf.mxu2 }
 0x14f   :  { %v324_v31 = vadd.f32 %v678_v26, %v323_v30 }
 0x151   :  { %v327_v32 = vmax.f32 %v324_v31, 0.0 }
 0x153   :  { %645 = vmatmul.msk.f32.gmra.mxu3 %vm336_vm2, %v327_v32  ;;  %v590_v32 = vld [vmem:[%s1232_s18 + $0x8] sm:$0xff] }
 0x1ce   :  { %v360_v37 = vpop.f32.mrf.mxu3 }
 0x1cf   :  { %v361_v38 = vadd.f32 %v679_v36, %v360_v37 }
 0x1d1   :  { %v366_v39 = vmax.f32 %v361_v38, 0.0 }
 0x1d3   :  { %646 = vmatmul.msk.f32.vlgmr.msrb.gmra.mxu0 %vm336_vm2, %v366_v39 }
 0x1d6   :  { %v363_v40 = vpop.f32.mrf.mxu3 }
 0x1d7   :  { %v364_v41 = vadd.f32 %v679_v36, %v363_v40 }
 0x1d9   :  { %v367_v42 = vmax.f32 %v364_v41, 0.0 }
 0x1db   :  { %647 = vmatmul.msk.f32.gmra.mxu0 %vm336_vm2, %v367_v42 }
 0x250   :  { %v399_v50 = vpop.f32.mrf.mxu0 }
 0x251   :  { %v400_v51 = vadd.f32 %v681_v49, %v399_v50 }
 0x253   :  { %v405_v52 = vmax.f32 %v400_v51, 0.0 }
 0x255   :  { %648 = vmatmul.msk.f32.vlgmr.msrb.gmra.mxu2 %vm336_vm2, %v405_v52  ;;  %v444_v0 = vmul.f32 %v405_v52, %v1096_v9  ;;  %v511_v9 = vld [vmem:[%s1226_s12] sm:$0xff] }
 0x256   :  { %540 = vmatpush.msra.mxu0 %v511_v9 }
 0x258   :  { %v402_v53 = vpop.f32.mrf.mxu0 }
 0x259   :  { %v403_v54 = vadd.f32 %v681_v49, %v402_v53 }
 0x25b   :  { %v406_v55 = vmax.f32 %v403_v54, 0.0 }
 0x25d   :  { %649 = vmatmul.msk.f32.gmra.mxu2 %vm336_vm2, %v406_v55  ;;  %463 = vmatpush.msrb.mxu1 %v406_v55  ;;  %v445_v6 = vmul.f32 %v406_v55, %v1099_v13  ;;  %v682_v13 = vld [vmem:[#allocation12] ss:$0 sm:$0xff] }
 0x25f   :  { %464 = vmatpush.msrb.mxu1 %v405_v52  ;;  %v448_v7 = vmul.f32 %v446_v2, %v445_v6 }
 0x260   :  { %652 = vmatmul.msk.f32.vlgmr.msrb.gmra.mxu1 %vm262_vm0, %v1082_v3  ;;  %v447_v3 = vmul.f32 %v446_v2, %v444_v0 }
 0x261   :  { %611 = vmatpush.msra.mxu1 %v592_v23 }
 0x263   :  { %612 = vmatpush.msra.mxu1 %v591_v24 }
 0x265   :  { %613 = vmatpush.msra.mxu1 %v590_v32 }
 0x267   :  { %614 = vmatpush.msra.mxu1 %v589_v33 }
 0x268   :  { %653 = vmatmul.msk.f32.gmra.mxu1 %vm262_vm0, %v1084_v4 }
 0x2d8   :  { %v434_v63 = vpop.f32.mrf.mxu2 }
 0x2d9   :  { %v440_v1 = vadd.f32 %v434_v63, %v240_v62 }
 0x2dd   :  { %v466_v4 = vpop.f32.mrf.mxu1 }
 0x2de   :  { %v467_v5 = vadd.f32 %v466_v4, %v447_v3 }
 0x2e0   :  { %654 = vmatmul.msk.f32.vlgmr.msra.gmra.mxu3 %vm336_vm2, %v467_v5  ;;  %v437_v34 = vpop.f32.mrf.mxu2 }
 0x2e1   :  { %v441_v45 = vadd.f32 %v437_v34, %v243_v44 }
 0x2e5   :  { %v469_v8 = vpop.f32.mrf.mxu1 }
 0x2e6   :  { %v470_v10 = vadd.f32 %v469_v8, %v448_v7 }
 0x2e8   :  { %655 = vmatmul.msk.f32.gmra.mxu3 %vm336_vm2, %v470_v10 }
 0x363   :  { %v503_v15 = vpop.f32.mrf.mxu3 }
 0x364   :  { %v504_v16 = vadd.f32 %v682_v13, %v503_v15 }
 0x366   :  { %v509_v17 = vmax.f32 %v504_v16, 0.0 }
 0x368   :  { %656 = vmatmul.msk.f32.vlgmr.msra.gmra.mxu0 %vm336_vm2, %v509_v17 }
 0x36b   :  { %v506_v18 = vpop.f32.mrf.mxu3 }
 0x36c   :  { %v507_v19 = vadd.f32 %v682_v13, %v506_v18 }
 0x36e   :  { %v510_v20 = vmax.f32 %v507_v19, 0.0 }
 0x370   :  { %657 = vmatmul.msk.f32.gmra.mxu0 %vm336_vm2, %v510_v20 }
 0x3e5   :  { %v542_v26 = vpop.f32.mrf.mxu0 }
 0x3e6   :  { %v543_v27 = vadd.f32 %v683_v25, %v542_v26 }
 0x3e8   :  { %v548_v28 = vmax.f32 %v543_v27, 0.0 }
 0x3ea   :  { %658 = vmatmul.msk.f32.vlgmr.msra.gmra.mxu2 %vm336_vm2, %v548_v28 }
 0x3ed   :  { %v545_v29 = vpop.f32.mrf.mxu0 }
 0x3ee   :  { %v546_v30 = vadd.f32 %v683_v25, %v545_v29 }
 0x3f0   :  { %v549_v31 = vmax.f32 %v546_v30, 0.0 }
 0x3f2   :  { %659 = vmatmul.msk.f32.gmra.mxu2 %vm336_vm2, %v549_v31 }
 0x46d   :  { %v581_v36 = vpop.f32.mrf.mxu2 }
 0x46e   :  { %v582_v37 = vadd.f32 %v684_v35, %v581_v36 }
 0x470   :  { %v587_v38 = vmax.f32 %v582_v37, 0.0 }
 0x472   :  { %660 = vmatmul.msk.f32.vlgmr.msra.gmra.mxu1 %vm336_vm2, %v587_v38 }
 0x475   :  { %v584_v39 = vpop.f32.mrf.mxu2 }
 0x476   :  { %v585_v40 = vadd.f32 %v684_v35, %v584_v39 }
 0x478   :  { %v588_v41 = vmax.f32 %v585_v40, 0.0 }
 0x47a   :  { %661 = vmatmul.msk.f32.gmra.mxu1 %vm336_vm2, %v588_v41 }
 0x4ef   :  { %v616_v42 = vpop.f32.mrf.mxu1 }
 0x4f0   :  { %v622_v43 = vadd.f32 %v616_v42, %v440_v1 }
 0x4f2   :  { %625 = vst.msk [vmem:[%s1249_s26] sm:$0xff] %vm624_vm3, %v622_v43 }
 0x4f7   :  { %v619_v46 = vpop.f32.mrf.mxu1 }
 0x4f8   :  { %v623_v48 = vadd.f32 %v619_v46, %v441_v45 }
 0x4fa   :  { %626 = vst.msk [vmem:[%s1249_s26 + $0x8] sm:$0xff] %vm624_vm3, %v623_v48 }
 0x4fb   :  { %631 = vsyncpa [#allocation3], 1 }
 0x4fc   :  { %632 = vsyncpa [#allocation7], 1 }
 0x4fd   :  { %633 = vsyncpa [#allocation10], 1 }
 0x4fe   :  { %634 = vsyncpa [#allocation13], 1 }
 0x4ff   :  { %635 = vsyncpa [#allocation16], 1 }
 0x500   :  { %636 = vsyncpa [#allocation4], 1 }

</bundles_post_ra>
